<compile_context>
chip_gen: v5e
topology: v5e:2x2
jax: 0.10.0
libtpu: 0.0.40
codegen_flags: <defaults>
</compile_context>

<pallas_src>
import jax
import jax.numpy as jnp
from jax.experimental import pallas as pl
from jax.experimental.pallas import tpu as pltpu

_LANES = 128                 # full vreg lane width -> unmasked vector stores
_SMALL_MAX_ELEMS = 128 * 1024  # <= 512 KiB fp32: run as one whole-array block


def _relu_kernel(x_ref, o_ref):
    # Pure VPU elementwise max(x, 0) on the VMEM-resident block.
    o_ref[...] = jnp.maximum(x_ref[...], jnp.zeros((), x_ref.dtype))


def _tile_rows_for_device() -> int:
    """Rows per grid step for the tiled (large-input) path, per TPU generation."""
    try:
        kind = jax.devices()[0].device_kind.lower()
    except Exception:  # pragma: no cover - defensive; any failure -> safe default
        kind = ""
    # v7x: 3.2 TB/s HBM -> 4 MiB blocks needed to amortise per-step overhead;
    # 4 buffers (in+out, double-buffered) = 16 MiB, inside the 32 MiB default
    # scoped VMEM.  v5e/v6e already saturate HBM at ~2 MiB blocks and v5e only
    # has 16 MiB default scoped VMEM, so stay at 4096 rows there.
    if "v7" in kind or "7x" in kind:
        return 8192
    return 4096


def _relu_small(x: jax.Array) -> jax.Array:
    """Whole-array single-block path: no grid, no reshape, no pad, in place."""
    vmem_spec = pl.BlockSpec(memory_space=pltpu.MemorySpace.VMEM)
    return pl.pallas_call(
        _relu_kernel,
        out_shape=jax.ShapeDtypeStruct(x.shape, x.dtype),
        in_specs=[vmem_spec],
        out_specs=vmem_spec,
        input_output_aliases={0: 0},  # in place, like ReLU(inplace=True)
    )(x)


def _relu_tiled(x: jax.Array) -> jax.Array:
    """Lane-dense streaming path for large activations."""
    total = x.size
    tile_rows = _tile_rows_for_device()

    flat = x.reshape(-1)                      # free: contiguous collapse
    pad = (-total) % _LANES
    if pad:
        # Only for sizes that are not a multiple of 128: pad by at most 127
        # elements (ReLU(0) = 0, harmless).  Typical conv/linear activation
        # sizes never hit this branch, so the common case is pad/slice free.
        flat = jnp.pad(flat, (0, pad))

    rows = flat.size // _LANES
    slab = flat.reshape(rows, _LANES)         # free: minor-dim split
    num_tiles = pl.cdiv(rows, tile_rows)      # ragged final block -> Pallas masks

    out_slab = pl.pallas_call(
        _relu_kernel,
        out_shape=jax.ShapeDtypeStruct(slab.shape, slab.dtype),
        grid=(num_tiles,),
        in_specs=[pl.BlockSpec((tile_rows, _LANES), lambda i: (i, 0))],
        out_specs=pl.BlockSpec((tile_rows, _LANES), lambda i: (i, 0)),
        input_output_aliases={0: 0},          # in place on the slab
        compiler_params=pltpu.CompilerParams(
            dimension_semantics=("parallel",),
        ),
    )(slab)

    out_flat = out_slab.reshape(-1)
    if pad:
        out_flat = out_flat[:total]
    return out_flat.reshape(x.shape)


def relu_pallas(x: jax.Array) -> jax.Array:
    """ReLU over an arbitrary-shape tensor via a Pallas TPU kernel."""
    if x.size <= _SMALL_MAX_ELEMS:
        return _relu_small(x)
    return _relu_tiled(x)


if __name__ == "__main__":
    # Shape from the reference module: x528 = torch.randn([1, 192, 7, 7])
    key = jax.random.PRNGKey(0)
    x = jax.random.normal(key, (1, 192, 7, 7), dtype=jnp.float32)

    x_shape, x_dtype = x.shape, x.dtype
    y_ref = jnp.maximum(x, 0.0)               # reference BEFORE x is donated

    # donate_argnums makes the pallas input_output_aliases a real in-place op
    # (no defensive copy before the custom call).
    relu_fn = jax.jit(relu_pallas, donate_argnums=0)
    y = relu_fn(x)
    jax.block_until_ready(y)

    assert y.shape == x_shape and y.dtype == x_dtype
    assert bool(jnp.allclose(y, y_ref)), "Pallas ReLU mismatch vs reference"

    print("KERNEL_OK")
</pallas_src>

<mosaic_0001>
module attributes {stable_mosaic.version = 11 : i64} {
  func.func @_relu_kernel(%arg0: memref<1x192x7x7xf32, #tpu.memory_space<vmem>>, %arg1: memref<1x192x7x7xf32, #tpu.memory_space<vmem>>) attributes {dimension_semantics = [], scalar_prefetch = 0 : i64, scratch_operands = 0 : i64, tpu.core_type = #tpu.core_type<tc>} {
    %c0 = arith.constant 0 : index
    %c0_0 = arith.constant 0 : index
    %c0_1 = arith.constant 0 : index
    %c0_2 = arith.constant 0 : index
    %0 = vector.load %arg0[%c0, %c0_0, %c0_1, %c0_2] : memref<1x192x7x7xf32, #tpu.memory_space<vmem>>, vector<1x192x7x7xf32>
    %cst = arith.constant 0.000000e+00 : f32
    %1 = vector.broadcast %cst : f32 to vector<1x192x7x7xf32>
    %2 = arith.maximumf %0, %1 : vector<1x192x7x7xf32>
    %c0_3 = arith.constant 0 : index
    %c0_4 = arith.constant 0 : index
    %c0_5 = arith.constant 0 : index
    %c0_6 = arith.constant 0 : index
    %3 = vector.load %arg1[%c0_3, %c0_4, %c0_5, %c0_6] : memref<1x192x7x7xf32, #tpu.memory_space<vmem>>, vector<1x192x7x7xf32>
    tpu.vector_store %arg1[%c0_3, %c0_4, %c0_5, %c0_6], %2 {strides = array<i32>} : memref<1x192x7x7xf32, #tpu.memory_space<vmem>>, vector<1x192x7x7xf32>,
    return
  }
}

</mosaic_0001>

<bundles_post_ra>
// kernel: relu_pallas.1
= control target key start
LH: loop header
LB: loop body
LE: loop exit
PB: predicated region body
PF: predicated region fallthrough
CT: control target
= control target key end

     0   :  { %vm392_vm0 = vcmask 55296   ;;  %s1943_s0 = inlined_call_operand.vmem [shape: f32[1,192,7,7], index: 0, kind: input, shape index: {}, may-alias: {0,1}]   ;;  %s1944_s1 = inlined_call_operand.vmem [shape: f32[1,192,7,7], index: 1, kind: output, shape index: {}, may-alias: {0,1}]  }
   0x1   :  { %v8_v0 = vld [vmem:[%s1943_s0] sm:$0x7f]  ;;  %v9_v1 = vld [vmem:[%s1943_s0 + $0x8] sm:$0x7f]  ;;  %v10_v2 = vld [vmem:[%s1943_s0 + $0x10] sm:$0x7f] }
   0x2   :  { %v200_v3 = vmax.f32 %v8_v0, 0.0  ;;  %v201_v4 = vmax.f32 %v9_v1, 0.0  ;;  %v202_v5 = vmax.f32 %v10_v2, 0.0  ;;  %v11_v6 = vld [vmem:[%s1943_s0 + $0x18] sm:$0x7f] }
   0x3   :  { %v203_v7 = vmax.f32 %v11_v6, 0.0  ;;  %v12_v8 = vld [vmem:[%s1943_s0 + $0x20] sm:$0x7f]  ;;  %v13_v9 = vld [vmem:[%s1943_s0 + $0x28] sm:$0x7f] }
   0x4   :  { %393 = vst.msk [vmem:[%s1944_s1] sm:$0x7f] %vm392_vm0, %v200_v3  ;;  %v204_v10 = vmax.f32 %v12_v8, 0.0  ;;  %v205_v12 = vmax.f32 %v13_v9, 0.0 }
   0xb   :  { %v14_v11 = vld [vmem:[%s1943_s0 + $0x30] sm:$0x7f] }
   0xc   :  { %394 = vst.msk [vmem:[%s1944_s1 + $0x8] sm:$0x7f] %vm392_vm0, %v201_v4  ;;  %v206_v14 = vmax.f32 %v14_v11, 0.0 }
  0x13   :  { %v15_v13 = vld [vmem:[%s1943_s0 + $0x38] sm:$0x7f] }
  0x14   :  { %395 = vst.msk [vmem:[%s1944_s1 + $0x10] sm:$0x7f] %vm392_vm0, %v202_v5  ;;  %v207_v16 = vmax.f32 %v15_v13, 0.0 }
  0x1b   :  { %v16_v15 = vld [vmem:[%s1943_s0 + $0x40] sm:$0x7f] }
  0x1c   :  { %396 = vst.msk [vmem:[%s1944_s1 + $0x18] sm:$0x7f] %vm392_vm0, %v203_v7  ;;  %v208_v18 = vmax.f32 %v16_v15, 0.0 }
  0x23   :  { %v17_v17 = vld [vmem:[%s1943_s0 + $0x48] sm:$0x7f] }
  0x24   :  { %397 = vst.msk [vmem:[%s1944_s1 + $0x20] sm:$0x7f] %vm392_vm0, %v204_v10  ;;  %v209_v20 = vmax.f32 %v17_v17, 0.0 }
  0x2b   :  { %v18_v19 = vld [vmem:[%s1943_s0 + $0x50] sm:$0x7f] }
  0x2c   :  { %398 = vst.msk [vmem:[%s1944_s1 + $0x28] sm:$0x7f] %vm392_vm0, %v205_v12  ;;  %v210_v22 = vmax.f32 %v18_v19, 0.0 }
  0x33   :  { %v19_v21 = vld [vmem:[%s1943_s0 + $0x58] sm:$0x7f] }
  0x34   :  { %399 = vst.msk [vmem:[%s1944_s1 + $0x30] sm:$0x7f] %vm392_vm0, %v206_v14  ;;  %v211_v24 = vmax.f32 %v19_v21, 0.0 }
  0x3b   :  { %v20_v23 = vld [vmem:[%s1943_s0 + $0x60] sm:$0x7f] }
  0x3c   :  { %400 = vst.msk [vmem:[%s1944_s1 + $0x38] sm:$0x7f] %vm392_vm0, %v207_v16  ;;  %v212_v26 = vmax.f32 %v20_v23, 0.0 }
  0x43   :  { %v21_v25 = vld [vmem:[%s1943_s0 + $0x68] sm:$0x7f] }
  0x44   :  { %401 = vst.msk [vmem:[%s1944_s1 + $0x40] sm:$0x7f] %vm392_vm0, %v208_v18  ;;  %v213_v28 = vmax.f32 %v21_v25, 0.0 }
  0x4b   :  { %v22_v27 = vld [vmem:[%s1943_s0 + $0x70] sm:$0x7f] }
  0x4c   :  { %402 = vst.msk [vmem:[%s1944_s1 + $0x48] sm:$0x7f] %vm392_vm0, %v209_v20  ;;  %v214_v30 = vmax.f32 %v22_v27, 0.0 }
  0x53   :  { %v23_v29 = vld [vmem:[%s1943_s0 + $0x78] sm:$0x7f] }
  0x54   :  { %403 = vst.msk [vmem:[%s1944_s1 + $0x50] sm:$0x7f] %vm392_vm0, %v210_v22  ;;  %v215_v32 = vmax.f32 %v23_v29, 0.0 }
  0x5b   :  { %v24_v31 = vld [vmem:[%s1943_s0 + $0x80] sm:$0x7f] }
  0x5c   :  { %404 = vst.msk [vmem:[%s1944_s1 + $0x58] sm:$0x7f] %vm392_vm0, %v211_v24  ;;  %v216_v34 = vmax.f32 %v24_v31, 0.0 }
  0x63   :  { %v25_v33 = vld [vmem:[%s1943_s0 + $0x88] sm:$0x7f] }
  0x64   :  { %405 = vst.msk [vmem:[%s1944_s1 + $0x60] sm:$0x7f] %vm392_vm0, %v212_v26  ;;  %v217_v36 = vmax.f32 %v25_v33, 0.0 }
  0x6b   :  { %v26_v35 = vld [vmem:[%s1943_s0 + $0x90] sm:$0x7f] }
  0x6c   :  { %406 = vst.msk [vmem:[%s1944_s1 + $0x68] sm:$0x7f] %vm392_vm0, %v213_v28  ;;  %v218_v38 = vmax.f32 %v26_v35, 0.0 }
  0x73   :  { %v27_v37 = vld [vmem:[%s1943_s0 + $0x98] sm:$0x7f] }
  0x74   :  { %407 = vst.msk [vmem:[%s1944_s1 + $0x70] sm:$0x7f] %vm392_vm0, %v214_v30  ;;  %v219_v40 = vmax.f32 %v27_v37, 0.0 }
  0x7b   :  { %v28_v39 = vld [vmem:[%s1943_s0 + $0xa0] sm:$0x7f] }
  0x7c   :  { %408 = vst.msk [vmem:[%s1944_s1 + $0x78] sm:$0x7f] %vm392_vm0, %v215_v32  ;;  %v220_v42 = vmax.f32 %v28_v39, 0.0 }
  0x83   :  { %v29_v41 = vld [vmem:[%s1943_s0 + $0xa8] sm:$0x7f] }
  0x84   :  { %409 = vst.msk [vmem:[%s1944_s1 + $0x80] sm:$0x7f] %vm392_vm0, %v216_v34  ;;  %v221_v44 = vmax.f32 %v29_v41, 0.0 }
  0x8b   :  { %v30_v43 = vld [vmem:[%s1943_s0 + $0xb0] sm:$0x7f] }
  0x8c   :  { %410 = vst.msk [vmem:[%s1944_s1 + $0x88] sm:$0x7f] %vm392_vm0, %v217_v36  ;;  %v222_v46 = vmax.f32 %v30_v43, 0.0 }
  0x93   :  { %v31_v45 = vld [vmem:[%s1943_s0 + $0xb8] sm:$0x7f] }
  0x94   :  { %411 = vst.msk [vmem:[%s1944_s1 + $0x90] sm:$0x7f] %vm392_vm0, %v218_v38  ;;  %v223_v48 = vmax.f32 %v31_v45, 0.0 }
  0x9b   :  { %v32_v47 = vld [vmem:[%s1943_s0 + $0xc0] sm:$0x7f] }
  0x9c   :  { %412 = vst.msk [vmem:[%s1944_s1 + $0x98] sm:$0x7f] %vm392_vm0, %v219_v40  ;;  %v224_v50 = vmax.f32 %v32_v47, 0.0 }
  0xa3   :  { %v33_v49 = vld [vmem:[%s1943_s0 + $0xc8] sm:$0x7f] }
  0xa4   :  { %413 = vst.msk [vmem:[%s1944_s1 + $0xa0] sm:$0x7f] %vm392_vm0, %v220_v42  ;;  %v225_v52 = vmax.f32 %v33_v49, 0.0 }
  0xab   :  { %v34_v51 = vld [vmem:[%s1943_s0 + $0xd0] sm:$0x7f] }
  0xac   :  { %414 = vst.msk [vmem:[%s1944_s1 + $0xa8] sm:$0x7f] %vm392_vm0, %v221_v44  ;;  %v226_v54 = vmax.f32 %v34_v51, 0.0 }
  0xb3   :  { %v35_v53 = vld [vmem:[%s1943_s0 + $0xd8] sm:$0x7f] }
  0xb4   :  { %415 = vst.msk [vmem:[%s1944_s1 + $0xb0] sm:$0x7f] %vm392_vm0, %v222_v46  ;;  %v227_v56 = vmax.f32 %v35_v53, 0.0 }
  0xbb   :  { %v36_v55 = vld [vmem:[%s1943_s0 + $0xe0] sm:$0x7f] }
  0xbc   :  { %416 = vst.msk [vmem:[%s1944_s1 + $0xb8] sm:$0x7f] %vm392_vm0, %v223_v48  ;;  %v228_v58 = vmax.f32 %v36_v55, 0.0 }
  0xc3   :  { %v37_v57 = vld [vmem:[%s1943_s0 + $0xe8] sm:$0x7f] }
  0xc4   :  { %417 = vst.msk [vmem:[%s1944_s1 + $0xc0] sm:$0x7f] %vm392_vm0, %v224_v50  ;;  %v229_v60 = vmax.f32 %v37_v57, 0.0 }
  0xcb   :  { %v38_v59 = vld [vmem:[%s1943_s0 + $0xf0] sm:$0x7f] }
  0xcc   :  { %418 = vst.msk [vmem:[%s1944_s1 + $0xc8] sm:$0x7f] %vm392_vm0, %v225_v52  ;;  %v230_v62 = vmax.f32 %v38_v59, 0.0 }
  0xd3   :  { %v39_v61 = vld [vmem:[%s1943_s0 + $0xf8] sm:$0x7f] }
  0xd4   :  { %419 = vst.msk [vmem:[%s1944_s1 + $0xd0] sm:$0x7f] %vm392_vm0, %v226_v54  ;;  %v231_v0 = vmax.f32 %v39_v61, 0.0 }
  0xdb   :  { %v40_v63 = vld [vmem:[%s1943_s0 + $0x100] sm:$0x7f] }
  0xdc   :  { %420 = vst.msk [vmem:[%s1944_s1 + $0xd8] sm:$0x7f] %vm392_vm0, %v227_v56  ;;  %v232_v2 = vmax.f32 %v40_v63, 0.0 }
  0xe3   :  { %v41_v1 = vld [vmem:[%s1943_s0 + $0x108] sm:$0x7f] }
  0xe4   :  { %421 = vst.msk [vmem:[%s1944_s1 + $0xe0] sm:$0x7f] %vm392_vm0, %v228_v58  ;;  %v233_v4 = vmax.f32 %v41_v1, 0.0 }
  0xeb   :  { %v42_v3 = vld [vmem:[%s1943_s0 + $0x110] sm:$0x7f] }
  0xec   :  { %422 = vst.msk [vmem:[%s1944_s1 + $0xe8] sm:$0x7f] %vm392_vm0, %v229_v60  ;;  %v234_v6 = vmax.f32 %v42_v3, 0.0 }
  0xf3   :  { %v43_v5 = vld [vmem:[%s1943_s0 + $0x118] sm:$0x7f] }
  0xf4   :  { %423 = vst.msk [vmem:[%s1944_s1 + $0xf0] sm:$0x7f] %vm392_vm0, %v230_v62  ;;  %v235_v8 = vmax.f32 %v43_v5, 0.0 }
  0xfb   :  { %v44_v7 = vld [vmem:[%s1943_s0 + $0x120] sm:$0x7f] }
  0xfc   :  { %424 = vst.msk [vmem:[%s1944_s1 + $0xf8] sm:$0x7f] %vm392_vm0, %v231_v0  ;;  %v236_v10 = vmax.f32 %v44_v7, 0.0 }
 0x103   :  { %v45_v9 = vld [vmem:[%s1943_s0 + $0x128] sm:$0x7f] }
 0x104   :  { %425 = vst.msk [vmem:[%s1944_s1 + $0x100] sm:$0x7f] %vm392_vm0, %v232_v2  ;;  %v237_v12 = vmax.f32 %v45_v9, 0.0 }
 0x10b   :  { %v46_v11 = vld [vmem:[%s1943_s0 + $0x130] sm:$0x7f] }
 0x10c   :  { %426 = vst.msk [vmem:[%s1944_s1 + $0x108] sm:$0x7f] %vm392_vm0, %v233_v4  ;;  %v238_v14 = vmax.f32 %v46_v11, 0.0 }
 0x113   :  { %v47_v13 = vld [vmem:[%s1943_s0 + $0x138] sm:$0x7f] }
 0x114   :  { %427 = vst.msk [vmem:[%s1944_s1 + $0x110] sm:$0x7f] %vm392_vm0, %v234_v6  ;;  %v239_v16 = vmax.f32 %v47_v13, 0.0 }
 0x11b   :  { %v48_v15 = vld [vmem:[%s1943_s0 + $0x140] sm:$0x7f] }
 0x11c   :  { %428 = vst.msk [vmem:[%s1944_s1 + $0x118] sm:$0x7f] %vm392_vm0, %v235_v8  ;;  %v240_v18 = vmax.f32 %v48_v15, 0.0 }
 0x123   :  { %v49_v17 = vld [vmem:[%s1943_s0 + $0x148] sm:$0x7f] }
 0x124   :  { %429 = vst.msk [vmem:[%s1944_s1 + $0x120] sm:$0x7f] %vm392_vm0, %v236_v10  ;;  %v241_v20 = vmax.f32 %v49_v17, 0.0 }
 0x12b   :  { %v50_v19 = vld [vmem:[%s1943_s0 + $0x150] sm:$0x7f] }
 0x12c   :  { %430 = vst.msk [vmem:[%s1944_s1 + $0x128] sm:$0x7f] %vm392_vm0, %v237_v12  ;;  %v242_v22 = vmax.f32 %v50_v19, 0.0 }
 0x133   :  { %v51_v21 = vld [vmem:[%s1943_s0 + $0x158] sm:$0x7f] }
 0x134   :  { %431 = vst.msk [vmem:[%s1944_s1 + $0x130] sm:$0x7f] %vm392_vm0, %v238_v14  ;;  %v243_v24 = vmax.f32 %v51_v21, 0.0 }
 0x13b   :  { %v52_v23 = vld [vmem:[%s1943_s0 + $0x160] sm:$0x7f] }
 0x13c   :  { %432 = vst.msk [vmem:[%s1944_s1 + $0x138] sm:$0x7f] %vm392_vm0, %v239_v16  ;;  %v244_v26 = vmax.f32 %v52_v23, 0.0 }
 0x143   :  { %v53_v25 = vld [vmem:[%s1943_s0 + $0x168] sm:$0x7f] }
 0x144   :  { %433 = vst.msk [vmem:[%s1944_s1 + $0x140] sm:$0x7f] %vm392_vm0, %v240_v18  ;;  %v245_v28 = vmax.f32 %v53_v25, 0.0 }
 0x14b   :  { %v54_v27 = vld [vmem:[%s1943_s0 + $0x170] sm:$0x7f] }
 0x14c   :  { %434 = vst.msk [vmem:[%s1944_s1 + $0x148] sm:$0x7f] %vm392_vm0, %v241_v20  ;;  %v246_v30 = vmax.f32 %v54_v27, 0.0 }
 0x153   :  { %v55_v29 = vld [vmem:[%s1943_s0 + $0x178] sm:$0x7f] }
 0x154   :  { %435 = vst.msk [vmem:[%s1944_s1 + $0x150] sm:$0x7f] %vm392_vm0, %v242_v22  ;;  %v247_v32 = vmax.f32 %v55_v29, 0.0 }
 0x15b   :  { %v56_v31 = vld [vmem:[%s1943_s0 + $0x180] sm:$0x7f] }
 0x15c   :  { %436 = vst.msk [vmem:[%s1944_s1 + $0x158] sm:$0x7f] %vm392_vm0, %v243_v24  ;;  %v248_v34 = vmax.f32 %v56_v31, 0.0 }
 0x163   :  { %v57_v33 = vld [vmem:[%s1943_s0 + $0x188] sm:$0x7f] }
 0x164   :  { %437 = vst.msk [vmem:[%s1944_s1 + $0x160] sm:$0x7f] %vm392_vm0, %v244_v26  ;;  %v249_v36 = vmax.f32 %v57_v33, 0.0 }
 0x16b   :  { %v58_v35 = vld [vmem:[%s1943_s0 + $0x190] sm:$0x7f] }
 0x16c   :  { %438 = vst.msk [vmem:[%s1944_s1 + $0x168] sm:$0x7f] %vm392_vm0, %v245_v28  ;;  %v250_v38 = vmax.f32 %v58_v35, 0.0 }
 0x173   :  { %v59_v37 = vld [vmem:[%s1943_s0 + $0x198] sm:$0x7f] }
 0x174   :  { %439 = vst.msk [vmem:[%s1944_s1 + $0x170] sm:$0x7f] %vm392_vm0, %v246_v30  ;;  %v251_v40 = vmax.f32 %v59_v37, 0.0 }
 0x17b   :  { %v60_v39 = vld [vmem:[%s1943_s0 + $0x1a0] sm:$0x7f] }
 0x17c   :  { %440 = vst.msk [vmem:[%s1944_s1 + $0x178] sm:$0x7f] %vm392_vm0, %v247_v32  ;;  %v252_v42 = vmax.f32 %v60_v39, 0.0 }
 0x183   :  { %v61_v41 = vld [vmem:[%s1943_s0 + $0x1a8] sm:$0x7f] }
 0x184   :  { %441 = vst.msk [vmem:[%s1944_s1 + $0x180] sm:$0x7f] %vm392_vm0, %v248_v34  ;;  %v253_v44 = vmax.f32 %v61_v41, 0.0 }
 0x18b   :  { %v62_v43 = vld [vmem:[%s1943_s0 + $0x1b0] sm:$0x7f] }
 0x18c   :  { %442 = vst.msk [vmem:[%s1944_s1 + $0x188] sm:$0x7f] %vm392_vm0, %v249_v36  ;;  %v254_v46 = vmax.f32 %v62_v43, 0.0 }
 0x193   :  { %v63_v45 = vld [vmem:[%s1943_s0 + $0x1b8] sm:$0x7f] }
 0x194   :  { %443 = vst.msk [vmem:[%s1944_s1 + $0x190] sm:$0x7f] %vm392_vm0, %v250_v38  ;;  %v255_v48 = vmax.f32 %v63_v45, 0.0 }
 0x19b   :  { %v64_v47 = vld [vmem:[%s1943_s0 + $0x1c0] sm:$0x7f] }
 0x19c   :  { %444 = vst.msk [vmem:[%s1944_s1 + $0x198] sm:$0x7f] %vm392_vm0, %v251_v40  ;;  %v256_v50 = vmax.f32 %v64_v47, 0.0 }
 0x1a3   :  { %v65_v49 = vld [vmem:[%s1943_s0 + $0x1c8] sm:$0x7f] }
 0x1a4   :  { %445 = vst.msk [vmem:[%s1944_s1 + $0x1a0] sm:$0x7f] %vm392_vm0, %v252_v42  ;;  %v257_v52 = vmax.f32 %v65_v49, 0.0 }
 0x1ab   :  { %v66_v51 = vld [vmem:[%s1943_s0 + $0x1d0] sm:$0x7f] }
 0x1ac   :  { %446 = vst.msk [vmem:[%s1944_s1 + $0x1a8] sm:$0x7f] %vm392_vm0, %v253_v44  ;;  %v258_v54 = vmax.f32 %v66_v51, 0.0 }
 0x1b3   :  { %v67_v53 = vld [vmem:[%s1943_s0 + $0x1d8] sm:$0x7f] }
 0x1b4   :  { %447 = vst.msk [vmem:[%s1944_s1 + $0x1b0] sm:$0x7f] %vm392_vm0, %v254_v46  ;;  %v259_v56 = vmax.f32 %v67_v53, 0.0 }
 0x1bb   :  { %v68_v55 = vld [vmem:[%s1943_s0 + $0x1e0] sm:$0x7f] }
 0x1bc   :  { %448 = vst.msk [vmem:[%s1944_s1 + $0x1b8] sm:$0x7f] %vm392_vm0, %v255_v48  ;;  %v260_v58 = vmax.f32 %v68_v55, 0.0 }
 0x1c3   :  { %v69_v57 = vld [vmem:[%s1943_s0 + $0x1e8] sm:$0x7f] }
 0x1c4   :  { %449 = vst.msk [vmem:[%s1944_s1 + $0x1c0] sm:$0x7f] %vm392_vm0, %v256_v50  ;;  %v261_v60 = vmax.f32 %v69_v57, 0.0 }
 0x1cb   :  { %v70_v59 = vld [vmem:[%s1943_s0 + $0x1f0] sm:$0x7f] }
 0x1cc   :  { %450 = vst.msk [vmem:[%s1944_s1 + $0x1c8] sm:$0x7f] %vm392_vm0, %v257_v52  ;;  %v262_v62 = vmax.f32 %v70_v59, 0.0 }
 0x1d3   :  { %v71_v61 = vld [vmem:[%s1943_s0 + $0x1f8] sm:$0x7f] }
 0x1d4   :  { %451 = vst.msk [vmem:[%s1944_s1 + $0x1d0] sm:$0x7f] %vm392_vm0, %v258_v54  ;;  %v263_v0 = vmax.f32 %v71_v61, 0.0 }
 0x1db   :  { %v72_v63 = vld [vmem:[%s1943_s0 + $0x200] sm:$0x7f] }
 0x1dc   :  { %452 = vst.msk [vmem:[%s1944_s1 + $0x1d8] sm:$0x7f] %vm392_vm0, %v259_v56  ;;  %v264_v2 = vmax.f32 %v72_v63, 0.0 }
 0x1e3   :  { %v73_v1 = vld [vmem:[%s1943_s0 + $0x208] sm:$0x7f] }
 0x1e4   :  { %453 = vst.msk [vmem:[%s1944_s1 + $0x1e0] sm:$0x7f] %vm392_vm0, %v260_v58  ;;  %v265_v4 = vmax.f32 %v73_v1, 0.0 }
 0x1eb   :  { %v74_v3 = vld [vmem:[%s1943_s0 + $0x210] sm:$0x7f] }
 0x1ec   :  { %454 = vst.msk [vmem:[%s1944_s1 + $0x1e8] sm:$0x7f] %vm392_vm0, %v261_v60  ;;  %v266_v6 = vmax.f32 %v74_v3, 0.0 }
 0x1f3   :  { %v75_v5 = vld [vmem:[%s1943_s0 + $0x218] sm:$0x7f] }
 0x1f4   :  { %455 = vst.msk [vmem:[%s1944_s1 + $0x1f0] sm:$0x7f] %vm392_vm0, %v262_v62  ;;  %v267_v8 = vmax.f32 %v75_v5, 0.0 }
 0x1fb   :  { %v76_v7 = vld [vmem:[%s1943_s0 + $0x220] sm:$0x7f] }
 0x1fc   :  { %456 = vst.msk [vmem:[%s1944_s1 + $0x1f8] sm:$0x7f] %vm392_vm0, %v263_v0  ;;  %v268_v10 = vmax.f32 %v76_v7, 0.0 }
 0x203   :  { %v77_v9 = vld [vmem:[%s1943_s0 + $0x228] sm:$0x7f] }
 0x204   :  { %457 = vst.msk [vmem:[%s1944_s1 + $0x200] sm:$0x7f] %vm392_vm0, %v264_v2  ;;  %v269_v12 = vmax.f32 %v77_v9, 0.0 }
 0x20b   :  { %v78_v11 = vld [vmem:[%s1943_s0 + $0x230] sm:$0x7f] }
 0x20c   :  { %458 = vst.msk [vmem:[%s1944_s1 + $0x208] sm:$0x7f] %vm392_vm0, %v265_v4  ;;  %v270_v14 = vmax.f32 %v78_v11, 0.0 }
 0x213   :  { %v79_v13 = vld [vmem:[%s1943_s0 + $0x238] sm:$0x7f] }
 0x214   :  { %459 = vst.msk [vmem:[%s1944_s1 + $0x210] sm:$0x7f] %vm392_vm0, %v266_v6  ;;  %v271_v16 = vmax.f32 %v79_v13, 0.0 }
 0x21b   :  { %v80_v15 = vld [vmem:[%s1943_s0 + $0x240] sm:$0x7f] }
 0x21c   :  { %460 = vst.msk [vmem:[%s1944_s1 + $0x218] sm:$0x7f] %vm392_vm0, %v267_v8  ;;  %v272_v18 = vmax.f32 %v80_v15, 0.0 }
 0x223   :  { %v81_v17 = vld [vmem:[%s1943_s0 + $0x248] sm:$0x7f] }
 0x224   :  { %461 = vst.msk [vmem:[%s1944_s1 + $0x220] sm:$0x7f] %vm392_vm0, %v268_v10  ;;  %v273_v20 = vmax.f32 %v81_v17, 0.0 }
 0x22b   :  { %v82_v19 = vld [vmem:[%s1943_s0 + $0x250] sm:$0x7f] }
 0x22c   :  { %462 = vst.msk [vmem:[%s1944_s1 + $0x228] sm:$0x7f] %vm392_vm0, %v269_v12  ;;  %v274_v22 = vmax.f32 %v82_v19, 0.0 }
 0x233   :  { %v83_v21 = vld [vmem:[%s1943_s0 + $0x258] sm:$0x7f] }
 0x234   :  { %463 = vst.msk [vmem:[%s1944_s1 + $0x230] sm:$0x7f] %vm392_vm0, %v270_v14  ;;  %v275_v24 = vmax.f32 %v83_v21, 0.0 }
 0x23b   :  { %v84_v23 = vld [vmem:[%s1943_s0 + $0x260] sm:$0x7f] }
 0x23c   :  { %464 = vst.msk [vmem:[%s1944_s1 + $0x238] sm:$0x7f] %vm392_vm0, %v271_v16  ;;  %v276_v26 = vmax.f32 %v84_v23, 0.0 }
 0x243   :  { %v85_v25 = vld [vmem:[%s1943_s0 + $0x268] sm:$0x7f] }
 0x244   :  { %465 = vst.msk [vmem:[%s1944_s1 + $0x240] sm:$0x7f] %vm392_vm0, %v272_v18  ;;  %v277_v28 = vmax.f32 %v85_v25, 0.0 }
 0x24b   :  { %v86_v27 = vld [vmem:[%s1943_s0 + $0x270] sm:$0x7f] }
 0x24c   :  { %466 = vst.msk [vmem:[%s1944_s1 + $0x248] sm:$0x7f] %vm392_vm0, %v273_v20  ;;  %v278_v30 = vmax.f32 %v86_v27, 0.0 }
 0x253   :  { %v87_v29 = vld [vmem:[%s1943_s0 + $0x278] sm:$0x7f] }
 0x254   :  { %467 = vst.msk [vmem:[%s1944_s1 + $0x250] sm:$0x7f] %vm392_vm0, %v274_v22  ;;  %v279_v32 = vmax.f32 %v87_v29, 0.0 }
 0x25b   :  { %v88_v31 = vld [vmem:[%s1943_s0 + $0x280] sm:$0x7f] }
 0x25c   :  { %468 = vst.msk [vmem:[%s1944_s1 + $0x258] sm:$0x7f] %vm392_vm0, %v275_v24  ;;  %v280_v34 = vmax.f32 %v88_v31, 0.0 }
 0x263   :  { %v89_v33 = vld [vmem:[%s1943_s0 + $0x288] sm:$0x7f] }
 0x264   :  { %469 = vst.msk [vmem:[%s1944_s1 + $0x260] sm:$0x7f] %vm392_vm0, %v276_v26  ;;  %v281_v36 = vmax.f32 %v89_v33, 0.0 }
 0x26b   :  { %v90_v35 = vld [vmem:[%s1943_s0 + $0x290] sm:$0x7f] }
 0x26c   :  { %470 = vst.msk [vmem:[%s1944_s1 + $0x268] sm:$0x7f] %vm392_vm0, %v277_v28  ;;  %v282_v38 = vmax.f32 %v90_v35, 0.0 }
 0x273   :  { %v91_v37 = vld [vmem:[%s1943_s0 + $0x298] sm:$0x7f] }
 0x274   :  { %471 = vst.msk [vmem:[%s1944_s1 + $0x270] sm:$0x7f] %vm392_vm0, %v278_v30  ;;  %v283_v40 = vmax.f32 %v91_v37, 0.0 }
 0x27b   :  { %v92_v39 = vld [vmem:[%s1943_s0 + $0x2a0] sm:$0x7f] }
 0x27c   :  { %472 = vst.msk [vmem:[%s1944_s1 + $0x278] sm:$0x7f] %vm392_vm0, %v279_v32  ;;  %v284_v42 = vmax.f32 %v92_v39, 0.0 }
 0x283   :  { %v93_v41 = vld [vmem:[%s1943_s0 + $0x2a8] sm:$0x7f] }
 0x284   :  { %473 = vst.msk [vmem:[%s1944_s1 + $0x280] sm:$0x7f] %vm392_vm0, %v280_v34  ;;  %v285_v44 = vmax.f32 %v93_v41, 0.0 }
 0x28b   :  { %v94_v43 = vld [vmem:[%s1943_s0 + $0x2b0] sm:$0x7f] }
 0x28c   :  { %474 = vst.msk [vmem:[%s1944_s1 + $0x288] sm:$0x7f] %vm392_vm0, %v281_v36  ;;  %v286_v46 = vmax.f32 %v94_v43, 0.0 }
 0x293   :  { %v95_v45 = vld [vmem:[%s1943_s0 + $0x2b8] sm:$0x7f] }
 0x294   :  { %475 = vst.msk [vmem:[%s1944_s1 + $0x290] sm:$0x7f] %vm392_vm0, %v282_v38  ;;  %v287_v48 = vmax.f32 %v95_v45, 0.0 }
 0x29b   :  { %v96_v47 = vld [vmem:[%s1943_s0 + $0x2c0] sm:$0x7f] }
 0x29c   :  { %476 = vst.msk [vmem:[%s1944_s1 + $0x298] sm:$0x7f] %vm392_vm0, %v283_v40  ;;  %v288_v50 = vmax.f32 %v96_v47, 0.0 }
 0x2a3   :  { %v97_v49 = vld [vmem:[%s1943_s0 + $0x2c8] sm:$0x7f] }
 0x2a4   :  { %477 = vst.msk [vmem:[%s1944_s1 + $0x2a0] sm:$0x7f] %vm392_vm0, %v284_v42  ;;  %v289_v52 = vmax.f32 %v97_v49, 0.0 }
 0x2ab   :  { %v98_v51 = vld [vmem:[%s1943_s0 + $0x2d0] sm:$0x7f] }
 0x2ac   :  { %478 = vst.msk [vmem:[%s1944_s1 + $0x2a8] sm:$0x7f] %vm392_vm0, %v285_v44  ;;  %v290_v54 = vmax.f32 %v98_v51, 0.0 }
 0x2b3   :  { %v99_v53 = vld [vmem:[%s1943_s0 + $0x2d8] sm:$0x7f] }
 0x2b4   :  { %479 = vst.msk [vmem:[%s1944_s1 + $0x2b0] sm:$0x7f] %vm392_vm0, %v286_v46  ;;  %v291_v56 = vmax.f32 %v99_v53, 0.0 }
 0x2bb   :  { %v100_v55 = vld [vmem:[%s1943_s0 + $0x2e0] sm:$0x7f] }
 0x2bc   :  { %480 = vst.msk [vmem:[%s1944_s1 + $0x2b8] sm:$0x7f] %vm392_vm0, %v287_v48  ;;  %v292_v58 = vmax.f32 %v100_v55, 0.0 }
 0x2c3   :  { %v101_v57 = vld [vmem:[%s1943_s0 + $0x2e8] sm:$0x7f] }
 0x2c4   :  { %481 = vst.msk [vmem:[%s1944_s1 + $0x2c0] sm:$0x7f] %vm392_vm0, %v288_v50  ;;  %v293_v60 = vmax.f32 %v101_v57, 0.0 }
 0x2cb   :  { %v102_v59 = vld [vmem:[%s1943_s0 + $0x2f0] sm:$0x7f] }
 0x2cc   :  { %482 = vst.msk [vmem:[%s1944_s1 + $0x2c8] sm:$0x7f] %vm392_vm0, %v289_v52  ;;  %v294_v62 = vmax.f32 %v102_v59, 0.0 }
 0x2d3   :  { %v103_v61 = vld [vmem:[%s1943_s0 + $0x2f8] sm:$0x7f] }
 0x2d4   :  { %483 = vst.msk [vmem:[%s1944_s1 + $0x2d0] sm:$0x7f] %vm392_vm0, %v290_v54  ;;  %v295_v0 = vmax.f32 %v103_v61, 0.0 }
 0x2db   :  { %v104_v63 = vld [vmem:[%s1943_s0 + $0x300] sm:$0x7f] }
 0x2dc   :  { %484 = vst.msk [vmem:[%s1944_s1 + $0x2d8] sm:$0x7f] %vm392_vm0, %v291_v56  ;;  %v296_v2 = vmax.f32 %v104_v63, 0.0 }
 0x2e3   :  { %v105_v1 = vld [vmem:[%s1943_s0 + $0x308] sm:$0x7f] }
 0x2e4   :  { %485 = vst.msk [vmem:[%s1944_s1 + $0x2e0] sm:$0x7f] %vm392_vm0, %v292_v58  ;;  %v297_v4 = vmax.f32 %v105_v1, 0.0 }
 0x2eb   :  { %v106_v3 = vld [vmem:[%s1943_s0 + $0x310] sm:$0x7f] }
 0x2ec   :  { %486 = vst.msk [vmem:[%s1944_s1 + $0x2e8] sm:$0x7f] %vm392_vm0, %v293_v60  ;;  %v298_v6 = vmax.f32 %v106_v3, 0.0 }
 0x2f3   :  { %v107_v5 = vld [vmem:[%s1943_s0 + $0x318] sm:$0x7f] }
 0x2f4   :  { %487 = vst.msk [vmem:[%s1944_s1 + $0x2f0] sm:$0x7f] %vm392_vm0, %v294_v62  ;;  %v299_v8 = vmax.f32 %v107_v5, 0.0 }
 0x2fb   :  { %v108_v7 = vld [vmem:[%s1943_s0 + $0x320] sm:$0x7f] }
 0x2fc   :  { %488 = vst.msk [vmem:[%s1944_s1 + $0x2f8] sm:$0x7f] %vm392_vm0, %v295_v0  ;;  %v300_v10 = vmax.f32 %v108_v7, 0.0 }
 0x303   :  { %v109_v9 = vld [vmem:[%s1943_s0 + $0x328] sm:$0x7f] }
 0x304   :  { %489 = vst.msk [vmem:[%s1944_s1 + $0x300] sm:$0x7f] %vm392_vm0, %v296_v2  ;;  %v301_v12 = vmax.f32 %v109_v9, 0.0 }
 0x30b   :  { %v110_v11 = vld [vmem:[%s1943_s0 + $0x330] sm:$0x7f] }
 0x30c   :  { %490 = vst.msk [vmem:[%s1944_s1 + $0x308] sm:$0x7f] %vm392_vm0, %v297_v4  ;;  %v302_v14 = vmax.f32 %v110_v11, 0.0 }
 0x313   :  { %v111_v13 = vld [vmem:[%s1943_s0 + $0x338] sm:$0x7f] }
 0x314   :  { %491 = vst.msk [vmem:[%s1944_s1 + $0x310] sm:$0x7f] %vm392_vm0, %v298_v6  ;;  %v303_v16 = vmax.f32 %v111_v13, 0.0 }
 0x31b   :  { %v112_v15 = vld [vmem:[%s1943_s0 + $0x340] sm:$0x7f] }
 0x31c   :  { %492 = vst.msk [vmem:[%s1944_s1 + $0x318] sm:$0x7f] %vm392_vm0, %v299_v8  ;;  %v304_v18 = vmax.f32 %v112_v15, 0.0 }
 0x323   :  { %v113_v17 = vld [vmem:[%s1943_s0 + $0x348] sm:$0x7f] }
 0x324   :  { %493 = vst.msk [vmem:[%s1944_s1 + $0x320] sm:$0x7f] %vm392_vm0, %v300_v10  ;;  %v305_v20 = vmax.f32 %v113_v17, 0.0 }
 0x32b   :  { %v114_v19 = vld [vmem:[%s1943_s0 + $0x350] sm:$0x7f] }
 0x32c   :  { %494 = vst.msk [vmem:[%s1944_s1 + $0x328] sm:$0x7f] %vm392_vm0, %v301_v12  ;;  %v306_v22 = vmax.f32 %v114_v19, 0.0 }
 0x333   :  { %v115_v21 = vld [vmem:[%s1943_s0 + $0x358] sm:$0x7f] }
 0x334   :  { %495 = vst.msk [vmem:[%s1944_s1 + $0x330] sm:$0x7f] %vm392_vm0, %v302_v14  ;;  %v307_v24 = vmax.f32 %v115_v21, 0.0 }
 0x33b   :  { %v116_v23 = vld [vmem:[%s1943_s0 + $0x360] sm:$0x7f] }
 0x33c   :  { %496 = vst.msk [vmem:[%s1944_s1 + $0x338] sm:$0x7f] %vm392_vm0, %v303_v16  ;;  %v308_v26 = vmax.f32 %v116_v23, 0.0 }
 0x343   :  { %v117_v25 = vld [vmem:[%s1943_s0 + $0x368] sm:$0x7f] }
 0x344   :  { %497 = vst.msk [vmem:[%s1944_s1 + $0x340] sm:$0x7f] %vm392_vm0, %v304_v18  ;;  %v309_v28 = vmax.f32 %v117_v25, 0.0 }
 0x34b   :  { %v118_v27 = vld [vmem:[%s1943_s0 + $0x370] sm:$0x7f] }
 0x34c   :  { %498 = vst.msk [vmem:[%s1944_s1 + $0x348] sm:$0x7f] %vm392_vm0, %v305_v20  ;;  %v310_v30 = vmax.f32 %v118_v27, 0.0 }
 0x353   :  { %v119_v29 = vld [vmem:[%s1943_s0 + $0x378] sm:$0x7f] }
 0x354   :  { %499 = vst.msk [vmem:[%s1944_s1 + $0x350] sm:$0x7f] %vm392_vm0, %v306_v22  ;;  %v311_v32 = vmax.f32 %v119_v29, 0.0 }
 0x35b   :  { %v120_v31 = vld [vmem:[%s1943_s0 + $0x380] sm:$0x7f] }
 0x35c   :  { %500 = vst.msk [vmem:[%s1944_s1 + $0x358] sm:$0x7f] %vm392_vm0, %v307_v24  ;;  %v312_v34 = vmax.f32 %v120_v31, 0.0 }
 0x363   :  { %v121_v33 = vld [vmem:[%s1943_s0 + $0x388] sm:$0x7f] }
 0x364   :  { %501 = vst.msk [vmem:[%s1944_s1 + $0x360] sm:$0x7f] %vm392_vm0, %v308_v26  ;;  %v313_v36 = vmax.f32 %v121_v33, 0.0 }
 0x36b   :  { %v122_v35 = vld [vmem:[%s1943_s0 + $0x390] sm:$0x7f] }
 0x36c   :  { %502 = vst.msk [vmem:[%s1944_s1 + $0x368] sm:$0x7f] %vm392_vm0, %v309_v28  ;;  %v314_v38 = vmax.f32 %v122_v35, 0.0 }
 0x373   :  { %v123_v37 = vld [vmem:[%s1943_s0 + $0x398] sm:$0x7f] }
 0x374   :  { %503 = vst.msk [vmem:[%s1944_s1 + $0x370] sm:$0x7f] %vm392_vm0, %v310_v30  ;;  %v315_v40 = vmax.f32 %v123_v37, 0.0 }
 0x37b   :  { %v124_v39 = vld [vmem:[%s1943_s0 + $0x3a0] sm:$0x7f] }
 0x37c   :  { %504 = vst.msk [vmem:[%s1944_s1 + $0x378] sm:$0x7f] %vm392_vm0, %v311_v32  ;;  %v316_v42 = vmax.f32 %v124_v39, 0.0 }
 0x383   :  { %v125_v41 = vld [vmem:[%s1943_s0 + $0x3a8] sm:$0x7f] }
 0x384   :  { %505 = vst.msk [vmem:[%s1944_s1 + $0x380] sm:$0x7f] %vm392_vm0, %v312_v34  ;;  %v317_v44 = vmax.f32 %v125_v41, 0.0 }
 0x38b   :  { %v126_v43 = vld [vmem:[%s1943_s0 + $0x3b0] sm:$0x7f] }
 0x38c   :  { %506 = vst.msk [vmem:[%s1944_s1 + $0x388] sm:$0x7f] %vm392_vm0, %v313_v36  ;;  %v318_v46 = vmax.f32 %v126_v43, 0.0 }
 0x393   :  { %v127_v45 = vld [vmem:[%s1943_s0 + $0x3b8] sm:$0x7f] }
 0x394   :  { %507 = vst.msk [vmem:[%s1944_s1 + $0x390] sm:$0x7f] %vm392_vm0, %v314_v38  ;;  %v319_v48 = vmax.f32 %v127_v45, 0.0 }
 0x39b   :  { %v128_v47 = vld [vmem:[%s1943_s0 + $0x3c0] sm:$0x7f] }
 0x39c   :  { %508 = vst.msk [vmem:[%s1944_s1 + $0x398] sm:$0x7f] %vm392_vm0, %v315_v40  ;;  %v320_v50 = vmax.f32 %v128_v47, 0.0 }
 0x3a3   :  { %v129_v49 = vld [vmem:[%s1943_s0 + $0x3c8] sm:$0x7f] }
 0x3a4   :  { %509 = vst.msk [vmem:[%s1944_s1 + $0x3a0] sm:$0x7f] %vm392_vm0, %v316_v42  ;;  %v321_v52 = vmax.f32 %v129_v49, 0.0 }
 0x3ab   :  { %v130_v51 = vld [vmem:[%s1943_s0 + $0x3d0] sm:$0x7f] }
 0x3ac   :  { %510 = vst.msk [vmem:[%s1944_s1 + $0x3a8] sm:$0x7f] %vm392_vm0, %v317_v44  ;;  %v322_v54 = vmax.f32 %v130_v51, 0.0 }
 0x3b3   :  { %v131_v53 = vld [vmem:[%s1943_s0 + $0x3d8] sm:$0x7f] }
 0x3b4   :  { %511 = vst.msk [vmem:[%s1944_s1 + $0x3b0] sm:$0x7f] %vm392_vm0, %v318_v46  ;;  %v323_v56 = vmax.f32 %v131_v53, 0.0 }
 0x3bb   :  { %v132_v55 = vld [vmem:[%s1943_s0 + $0x3e0] sm:$0x7f] }
 0x3bc   :  { %512 = vst.msk [vmem:[%s1944_s1 + $0x3b8] sm:$0x7f] %vm392_vm0, %v319_v48  ;;  %v324_v58 = vmax.f32 %v132_v55, 0.0 }
 0x3c3   :  { %v133_v57 = vld [vmem:[%s1943_s0 + $0x3e8] sm:$0x7f] }
 0x3c4   :  { %513 = vst.msk [vmem:[%s1944_s1 + $0x3c0] sm:$0x7f] %vm392_vm0, %v320_v50  ;;  %v325_v60 = vmax.f32 %v133_v57, 0.0 }
 0x3cb   :  { %v134_v59 = vld [vmem:[%s1943_s0 + $0x3f0] sm:$0x7f] }
 0x3cc   :  { %514 = vst.msk [vmem:[%s1944_s1 + $0x3c8] sm:$0x7f] %vm392_vm0, %v321_v52  ;;  %v326_v62 = vmax.f32 %v134_v59, 0.0 }
 0x3d3   :  { %v135_v61 = vld [vmem:[%s1943_s0 + $0x3f8] sm:$0x7f] }
 0x3d4   :  { %515 = vst.msk [vmem:[%s1944_s1 + $0x3d0] sm:$0x7f] %vm392_vm0, %v322_v54  ;;  %v327_v0 = vmax.f32 %v135_v61, 0.0 }
 0x3db   :  { %v136_v63 = vld [vmem:[%s1943_s0 + $0x400] sm:$0x7f] }
 0x3dc   :  { %516 = vst.msk [vmem:[%s1944_s1 + $0x3d8] sm:$0x7f] %vm392_vm0, %v323_v56  ;;  %v328_v2 = vmax.f32 %v136_v63, 0.0 }
 0x3e3   :  { %v137_v1 = vld [vmem:[%s1943_s0 + $0x408] sm:$0x7f] }
 0x3e4   :  { %517 = vst.msk [vmem:[%s1944_s1 + $0x3e0] sm:$0x7f] %vm392_vm0, %v324_v58  ;;  %v329_v4 = vmax.f32 %v137_v1, 0.0 }
 0x3eb   :  { %v138_v3 = vld [vmem:[%s1943_s0 + $0x410] sm:$0x7f] }
 0x3ec   :  { %518 = vst.msk [vmem:[%s1944_s1 + $0x3e8] sm:$0x7f] %vm392_vm0, %v325_v60  ;;  %v330_v6 = vmax.f32 %v138_v3, 0.0 }
 0x3f3   :  { %v139_v5 = vld [vmem:[%s1943_s0 + $0x418] sm:$0x7f] }
 0x3f4   :  { %519 = vst.msk [vmem:[%s1944_s1 + $0x3f0] sm:$0x7f] %vm392_vm0, %v326_v62  ;;  %v331_v8 = vmax.f32 %v139_v5, 0.0 }
 0x3fb   :  { %v140_v7 = vld [vmem:[%s1943_s0 + $0x420] sm:$0x7f] }
 0x3fc   :  { %520 = vst.msk [vmem:[%s1944_s1 + $0x3f8] sm:$0x7f] %vm392_vm0, %v327_v0  ;;  %v332_v10 = vmax.f32 %v140_v7, 0.0 }
 0x403   :  { %v141_v9 = vld [vmem:[%s1943_s0 + $0x428] sm:$0x7f] }
 0x404   :  { %521 = vst.msk [vmem:[%s1944_s1 + $0x400] sm:$0x7f] %vm392_vm0, %v328_v2  ;;  %v333_v12 = vmax.f32 %v141_v9, 0.0 }
 0x40b   :  { %v142_v11 = vld [vmem:[%s1943_s0 + $0x430] sm:$0x7f] }
 0x40c   :  { %522 = vst.msk [vmem:[%s1944_s1 + $0x408] sm:$0x7f] %vm392_vm0, %v329_v4  ;;  %v334_v14 = vmax.f32 %v142_v11, 0.0 }
 0x413   :  { %v143_v13 = vld [vmem:[%s1943_s0 + $0x438] sm:$0x7f] }
 0x414   :  { %523 = vst.msk [vmem:[%s1944_s1 + $0x410] sm:$0x7f] %vm392_vm0, %v330_v6  ;;  %v335_v16 = vmax.f32 %v143_v13, 0.0 }
 0x41b   :  { %v144_v15 = vld [vmem:[%s1943_s0 + $0x440] sm:$0x7f] }
 0x41c   :  { %524 = vst.msk [vmem:[%s1944_s1 + $0x418] sm:$0x7f] %vm392_vm0, %v331_v8  ;;  %v336_v18 = vmax.f32 %v144_v15, 0.0 }
 0x423   :  { %v145_v17 = vld [vmem:[%s1943_s0 + $0x448] sm:$0x7f] }
 0x424   :  { %525 = vst.msk [vmem:[%s1944_s1 + $0x420] sm:$0x7f] %vm392_vm0, %v332_v10  ;;  %v337_v20 = vmax.f32 %v145_v17, 0.0 }
 0x42b   :  { %v146_v19 = vld [vmem:[%s1943_s0 + $0x450] sm:$0x7f] }
 0x42c   :  { %526 = vst.msk [vmem:[%s1944_s1 + $0x428] sm:$0x7f] %vm392_vm0, %v333_v12  ;;  %v338_v22 = vmax.f32 %v146_v19, 0.0 }
 0x433   :  { %v147_v21 = vld [vmem:[%s1943_s0 + $0x458] sm:$0x7f] }
 0x434   :  { %527 = vst.msk [vmem:[%s1944_s1 + $0x430] sm:$0x7f] %vm392_vm0, %v334_v14  ;;  %v339_v24 = vmax.f32 %v147_v21, 0.0 }
 0x43b   :  { %v148_v23 = vld [vmem:[%s1943_s0 + $0x460] sm:$0x7f] }
 0x43c   :  { %528 = vst.msk [vmem:[%s1944_s1 + $0x438] sm:$0x7f] %vm392_vm0, %v335_v16  ;;  %v340_v26 = vmax.f32 %v148_v23, 0.0 }
 0x443   :  { %v149_v25 = vld [vmem:[%s1943_s0 + $0x468] sm:$0x7f] }
 0x444   :  { %529 = vst.msk [vmem:[%s1944_s1 + $0x440] sm:$0x7f] %vm392_vm0, %v336_v18  ;;  %v341_v28 = vmax.f32 %v149_v25, 0.0 }
 0x44b   :  { %v150_v27 = vld [vmem:[%s1943_s0 + $0x470] sm:$0x7f] }
 0x44c   :  { %530 = vst.msk [vmem:[%s1944_s1 + $0x448] sm:$0x7f] %vm392_vm0, %v337_v20  ;;  %v342_v30 = vmax.f32 %v150_v27, 0.0 }
 0x453   :  { %v151_v29 = vld [vmem:[%s1943_s0 + $0x478] sm:$0x7f] }
 0x454   :  { %531 = vst.msk [vmem:[%s1944_s1 + $0x450] sm:$0x7f] %vm392_vm0, %v338_v22  ;;  %v343_v32 = vmax.f32 %v151_v29, 0.0 }
 0x45b   :  { %v152_v31 = vld [vmem:[%s1943_s0 + $0x480] sm:$0x7f] }
 0x45c   :  { %532 = vst.msk [vmem:[%s1944_s1 + $0x458] sm:$0x7f] %vm392_vm0, %v339_v24  ;;  %v344_v34 = vmax.f32 %v152_v31, 0.0 }
 0x463   :  { %v153_v33 = vld [vmem:[%s1943_s0 + $0x488] sm:$0x7f] }
 0x464   :  { %533 = vst.msk [vmem:[%s1944_s1 + $0x460] sm:$0x7f] %vm392_vm0, %v340_v26  ;;  %v345_v36 = vmax.f32 %v153_v33, 0.0 }
 0x46b   :  { %v154_v35 = vld [vmem:[%s1943_s0 + $0x490] sm:$0x7f] }
 0x46c   :  { %534 = vst.msk [vmem:[%s1944_s1 + $0x468] sm:$0x7f] %vm392_vm0, %v341_v28  ;;  %v346_v38 = vmax.f32 %v154_v35, 0.0 }
 0x473   :  { %v155_v37 = vld [vmem:[%s1943_s0 + $0x498] sm:$0x7f] }
 0x474   :  { %535 = vst.msk [vmem:[%s1944_s1 + $0x470] sm:$0x7f] %vm392_vm0, %v342_v30  ;;  %v347_v40 = vmax.f32 %v155_v37, 0.0 }
 0x47b   :  { %v156_v39 = vld [vmem:[%s1943_s0 + $0x4a0] sm:$0x7f] }
 0x47c   :  { %536 = vst.msk [vmem:[%s1944_s1 + $0x478] sm:$0x7f] %vm392_vm0, %v343_v32  ;;  %v348_v42 = vmax.f32 %v156_v39, 0.0 }
 0x483   :  { %v157_v41 = vld [vmem:[%s1943_s0 + $0x4a8] sm:$0x7f] }
 0x484   :  { %537 = vst.msk [vmem:[%s1944_s1 + $0x480] sm:$0x7f] %vm392_vm0, %v344_v34  ;;  %v349_v44 = vmax.f32 %v157_v41, 0.0 }
 0x48b   :  { %v158_v43 = vld [vmem:[%s1943_s0 + $0x4b0] sm:$0x7f] }
 0x48c   :  { %538 = vst.msk [vmem:[%s1944_s1 + $0x488] sm:$0x7f] %vm392_vm0, %v345_v36  ;;  %v350_v46 = vmax.f32 %v158_v43, 0.0 }
 0x493   :  { %v159_v45 = vld [vmem:[%s1943_s0 + $0x4b8] sm:$0x7f] }
 0x494   :  { %539 = vst.msk [vmem:[%s1944_s1 + $0x490] sm:$0x7f] %vm392_vm0, %v346_v38  ;;  %v351_v48 = vmax.f32 %v159_v45, 0.0 }
 0x49b   :  { %v160_v47 = vld [vmem:[%s1943_s0 + $0x4c0] sm:$0x7f] }
 0x49c   :  { %540 = vst.msk [vmem:[%s1944_s1 + $0x498] sm:$0x7f] %vm392_vm0, %v347_v40  ;;  %v352_v50 = vmax.f32 %v160_v47, 0.0 }
 0x4a3   :  { %v161_v49 = vld [vmem:[%s1943_s0 + $0x4c8] sm:$0x7f] }
 0x4a4   :  { %541 = vst.msk [vmem:[%s1944_s1 + $0x4a0] sm:$0x7f] %vm392_vm0, %v348_v42  ;;  %v353_v52 = vmax.f32 %v161_v49, 0.0 }
 0x4ab   :  { %v162_v51 = vld [vmem:[%s1943_s0 + $0x4d0] sm:$0x7f] }
 0x4ac   :  { %542 = vst.msk [vmem:[%s1944_s1 + $0x4a8] sm:$0x7f] %vm392_vm0, %v349_v44  ;;  %v354_v54 = vmax.f32 %v162_v51, 0.0 }
 0x4b3   :  { %v163_v53 = vld [vmem:[%s1943_s0 + $0x4d8] sm:$0x7f] }
 0x4b4   :  { %543 = vst.msk [vmem:[%s1944_s1 + $0x4b0] sm:$0x7f] %vm392_vm0, %v350_v46  ;;  %v355_v56 = vmax.f32 %v163_v53, 0.0 }
 0x4bb   :  { %v164_v55 = vld [vmem:[%s1943_s0 + $0x4e0] sm:$0x7f] }
 0x4bc   :  { %544 = vst.msk [vmem:[%s1944_s1 + $0x4b8] sm:$0x7f] %vm392_vm0, %v351_v48  ;;  %v356_v58 = vmax.f32 %v164_v55, 0.0 }
 0x4c3   :  { %v165_v57 = vld [vmem:[%s1943_s0 + $0x4e8] sm:$0x7f] }
 0x4c4   :  { %545 = vst.msk [vmem:[%s1944_s1 + $0x4c0] sm:$0x7f] %vm392_vm0, %v352_v50  ;;  %v357_v60 = vmax.f32 %v165_v57, 0.0 }
 0x4cb   :  { %v166_v59 = vld [vmem:[%s1943_s0 + $0x4f0] sm:$0x7f] }
 0x4cc   :  { %546 = vst.msk [vmem:[%s1944_s1 + $0x4c8] sm:$0x7f] %vm392_vm0, %v353_v52  ;;  %v358_v62 = vmax.f32 %v166_v59, 0.0 }
 0x4d3   :  { %v167_v61 = vld [vmem:[%s1943_s0 + $0x4f8] sm:$0x7f] }
 0x4d4   :  { %547 = vst.msk [vmem:[%s1944_s1 + $0x4d0] sm:$0x7f] %vm392_vm0, %v354_v54  ;;  %v359_v0 = vmax.f32 %v167_v61, 0.0 }
 0x4db   :  { %v168_v63 = vld [vmem:[%s1943_s0 + $0x500] sm:$0x7f] }
 0x4dc   :  { %548 = vst.msk [vmem:[%s1944_s1 + $0x4d8] sm:$0x7f] %vm392_vm0, %v355_v56  ;;  %v360_v2 = vmax.f32 %v168_v63, 0.0 }
 0x4e3   :  { %v169_v1 = vld [vmem:[%s1943_s0 + $0x508] sm:$0x7f] }
 0x4e4   :  { %549 = vst.msk [vmem:[%s1944_s1 + $0x4e0] sm:$0x7f] %vm392_vm0, %v356_v58  ;;  %v361_v4 = vmax.f32 %v169_v1, 0.0 }
 0x4eb   :  { %v170_v3 = vld [vmem:[%s1943_s0 + $0x510] sm:$0x7f] }
 0x4ec   :  { %550 = vst.msk [vmem:[%s1944_s1 + $0x4e8] sm:$0x7f] %vm392_vm0, %v357_v60  ;;  %v362_v6 = vmax.f32 %v170_v3, 0.0 }
 0x4f3   :  { %v171_v5 = vld [vmem:[%s1943_s0 + $0x518] sm:$0x7f] }
 0x4f4   :  { %551 = vst.msk [vmem:[%s1944_s1 + $0x4f0] sm:$0x7f] %vm392_vm0, %v358_v62  ;;  %v363_v8 = vmax.f32 %v171_v5, 0.0 }
 0x4fb   :  { %v172_v7 = vld [vmem:[%s1943_s0 + $0x520] sm:$0x7f] }
 0x4fc   :  { %552 = vst.msk [vmem:[%s1944_s1 + $0x4f8] sm:$0x7f] %vm392_vm0, %v359_v0  ;;  %v364_v10 = vmax.f32 %v172_v7, 0.0 }
 0x503   :  { %v173_v9 = vld [vmem:[%s1943_s0 + $0x528] sm:$0x7f] }
 0x504   :  { %553 = vst.msk [vmem:[%s1944_s1 + $0x500] sm:$0x7f] %vm392_vm0, %v360_v2  ;;  %v365_v12 = vmax.f32 %v173_v9, 0.0 }
 0x50b   :  { %v174_v11 = vld [vmem:[%s1943_s0 + $0x530] sm:$0x7f] }
 0x50c   :  { %554 = vst.msk [vmem:[%s1944_s1 + $0x508] sm:$0x7f] %vm392_vm0, %v361_v4  ;;  %v366_v14 = vmax.f32 %v174_v11, 0.0 }
 0x513   :  { %v175_v13 = vld [vmem:[%s1943_s0 + $0x538] sm:$0x7f] }
 0x514   :  { %555 = vst.msk [vmem:[%s1944_s1 + $0x510] sm:$0x7f] %vm392_vm0, %v362_v6  ;;  %v367_v16 = vmax.f32 %v175_v13, 0.0 }
 0x51b   :  { %v176_v15 = vld [vmem:[%s1943_s0 + $0x540] sm:$0x7f] }
 0x51c   :  { %556 = vst.msk [vmem:[%s1944_s1 + $0x518] sm:$0x7f] %vm392_vm0, %v363_v8  ;;  %v368_v18 = vmax.f32 %v176_v15, 0.0 }
 0x523   :  { %v177_v17 = vld [vmem:[%s1943_s0 + $0x548] sm:$0x7f] }
 0x524   :  { %557 = vst.msk [vmem:[%s1944_s1 + $0x520] sm:$0x7f] %vm392_vm0, %v364_v10  ;;  %v369_v20 = vmax.f32 %v177_v17, 0.0 }
 0x52b   :  { %v178_v19 = vld [vmem:[%s1943_s0 + $0x550] sm:$0x7f] }
 0x52c   :  { %558 = vst.msk [vmem:[%s1944_s1 + $0x528] sm:$0x7f] %vm392_vm0, %v365_v12  ;;  %v370_v22 = vmax.f32 %v178_v19, 0.0 }
 0x533   :  { %v179_v21 = vld [vmem:[%s1943_s0 + $0x558] sm:$0x7f] }
 0x534   :  { %559 = vst.msk [vmem:[%s1944_s1 + $0x530] sm:$0x7f] %vm392_vm0, %v366_v14  ;;  %v371_v24 = vmax.f32 %v179_v21, 0.0 }
 0x53b   :  { %v180_v23 = vld [vmem:[%s1943_s0 + $0x560] sm:$0x7f] }
 0x53c   :  { %560 = vst.msk [vmem:[%s1944_s1 + $0x538] sm:$0x7f] %vm392_vm0, %v367_v16  ;;  %v372_v26 = vmax.f32 %v180_v23, 0.0 }
 0x543   :  { %v181_v25 = vld [vmem:[%s1943_s0 + $0x568] sm:$0x7f] }
 0x544   :  { %561 = vst.msk [vmem:[%s1944_s1 + $0x540] sm:$0x7f] %vm392_vm0, %v368_v18  ;;  %v373_v28 = vmax.f32 %v181_v25, 0.0 }
 0x54b   :  { %v182_v27 = vld [vmem:[%s1943_s0 + $0x570] sm:$0x7f] }
 0x54c   :  { %562 = vst.msk [vmem:[%s1944_s1 + $0x548] sm:$0x7f] %vm392_vm0, %v369_v20  ;;  %v374_v30 = vmax.f32 %v182_v27, 0.0 }
 0x553   :  { %v183_v29 = vld [vmem:[%s1943_s0 + $0x578] sm:$0x7f] }
 0x554   :  { %563 = vst.msk [vmem:[%s1944_s1 + $0x550] sm:$0x7f] %vm392_vm0, %v370_v22  ;;  %v375_v32 = vmax.f32 %v183_v29, 0.0 }
 0x55b   :  { %v184_v31 = vld [vmem:[%s1943_s0 + $0x580] sm:$0x7f] }
 0x55c   :  { %564 = vst.msk [vmem:[%s1944_s1 + $0x558] sm:$0x7f] %vm392_vm0, %v371_v24  ;;  %v376_v34 = vmax.f32 %v184_v31, 0.0 }
 0x563   :  { %v185_v33 = vld [vmem:[%s1943_s0 + $0x588] sm:$0x7f] }
 0x564   :  { %565 = vst.msk [vmem:[%s1944_s1 + $0x560] sm:$0x7f] %vm392_vm0, %v372_v26  ;;  %v377_v36 = vmax.f32 %v185_v33, 0.0 }
 0x56b   :  { %v186_v35 = vld [vmem:[%s1943_s0 + $0x590] sm:$0x7f] }
 0x56c   :  { %566 = vst.msk [vmem:[%s1944_s1 + $0x568] sm:$0x7f] %vm392_vm0, %v373_v28  ;;  %v378_v38 = vmax.f32 %v186_v35, 0.0 }
 0x573   :  { %v187_v37 = vld [vmem:[%s1943_s0 + $0x598] sm:$0x7f] }
 0x574   :  { %567 = vst.msk [vmem:[%s1944_s1 + $0x570] sm:$0x7f] %vm392_vm0, %v374_v30  ;;  %v379_v40 = vmax.f32 %v187_v37, 0.0 }
 0x57b   :  { %v188_v39 = vld [vmem:[%s1943_s0 + $0x5a0] sm:$0x7f] }
 0x57c   :  { %568 = vst.msk [vmem:[%s1944_s1 + $0x578] sm:$0x7f] %vm392_vm0, %v375_v32  ;;  %v380_v42 = vmax.f32 %v188_v39, 0.0 }
 0x583   :  { %v189_v41 = vld [vmem:[%s1943_s0 + $0x5a8] sm:$0x7f] }
 0x584   :  { %569 = vst.msk [vmem:[%s1944_s1 + $0x580] sm:$0x7f] %vm392_vm0, %v376_v34  ;;  %v381_v44 = vmax.f32 %v189_v41, 0.0 }
 0x58b   :  { %v190_v43 = vld [vmem:[%s1943_s0 + $0x5b0] sm:$0x7f] }
 0x58c   :  { %570 = vst.msk [vmem:[%s1944_s1 + $0x588] sm:$0x7f] %vm392_vm0, %v377_v36  ;;  %v382_v46 = vmax.f32 %v190_v43, 0.0 }
 0x593   :  { %v191_v45 = vld [vmem:[%s1943_s0 + $0x5b8] sm:$0x7f] }
 0x594   :  { %571 = vst.msk [vmem:[%s1944_s1 + $0x590] sm:$0x7f] %vm392_vm0, %v378_v38  ;;  %v383_v48 = vmax.f32 %v191_v45, 0.0 }
 0x59b   :  { %v192_v47 = vld [vmem:[%s1943_s0 + $0x5c0] sm:$0x7f] }
 0x59c   :  { %572 = vst.msk [vmem:[%s1944_s1 + $0x598] sm:$0x7f] %vm392_vm0, %v379_v40  ;;  %v384_v50 = vmax.f32 %v192_v47, 0.0 }
 0x5a3   :  { %v193_v49 = vld [vmem:[%s1943_s0 + $0x5c8] sm:$0x7f] }
 0x5a4   :  { %573 = vst.msk [vmem:[%s1944_s1 + $0x5a0] sm:$0x7f] %vm392_vm0, %v380_v42  ;;  %v385_v52 = vmax.f32 %v193_v49, 0.0 }
 0x5ab   :  { %v194_v51 = vld [vmem:[%s1943_s0 + $0x5d0] sm:$0x7f] }
 0x5ac   :  { %574 = vst.msk [vmem:[%s1944_s1 + $0x5a8] sm:$0x7f] %vm392_vm0, %v381_v44  ;;  %v386_v54 = vmax.f32 %v194_v51, 0.0 }
 0x5b3   :  { %v195_v53 = vld [vmem:[%s1943_s0 + $0x5d8] sm:$0x7f] }
 0x5b4   :  { %575 = vst.msk [vmem:[%s1944_s1 + $0x5b0] sm:$0x7f] %vm392_vm0, %v382_v46  ;;  %v387_v56 = vmax.f32 %v195_v53, 0.0 }
 0x5bb   :  { %v196_v55 = vld [vmem:[%s1943_s0 + $0x5e0] sm:$0x7f] }
 0x5bc   :  { %576 = vst.msk [vmem:[%s1944_s1 + $0x5b8] sm:$0x7f] %vm392_vm0, %v383_v48  ;;  %v388_v58 = vmax.f32 %v196_v55, 0.0 }
 0x5c3   :  { %v197_v57 = vld [vmem:[%s1943_s0 + $0x5e8] sm:$0x7f] }
 0x5c4   :  { %577 = vst.msk [vmem:[%s1944_s1 + $0x5c0] sm:$0x7f] %vm392_vm0, %v384_v50  ;;  %v389_v60 = vmax.f32 %v197_v57, 0.0 }
 0x5cb   :  { %v198_v59 = vld [vmem:[%s1943_s0 + $0x5f0] sm:$0x7f] }
 0x5cc   :  { %578 = vst.msk [vmem:[%s1944_s1 + $0x5c8] sm:$0x7f] %vm392_vm0, %v385_v52  ;;  %v390_v62 = vmax.f32 %v198_v59, 0.0 }
 0x5d3   :  { %v199_v61 = vld [vmem:[%s1943_s0 + $0x5f8] sm:$0x7f] }
 0x5d4   :  { %579 = vst.msk [vmem:[%s1944_s1 + $0x5d0] sm:$0x7f] %vm392_vm0, %v386_v54  ;;  %v391_v63 = vmax.f32 %v199_v61, 0.0 }
 0x5d5   :  { %580 = vst.msk [vmem:[%s1944_s1 + $0x5d8] sm:$0x7f] %vm392_vm0, %v387_v56 }
 0x5d6   :  { %581 = vst.msk [vmem:[%s1944_s1 + $0x5e0] sm:$0x7f] %vm392_vm0, %v388_v58 }
 0x5d7   :  { %582 = vst.msk [vmem:[%s1944_s1 + $0x5e8] sm:$0x7f] %vm392_vm0, %v389_v60 }
 0x5d8   :  { %583 = vst.msk [vmem:[%s1944_s1 + $0x5f0] sm:$0x7f] %vm392_vm0, %v390_v62 }
 0x5d9   :  { %584 = vst.msk [vmem:[%s1944_s1 + $0x5f8] sm:$0x7f] %vm392_vm0, %v391_v63 }

</bundles_post_ra>
